<compile_context>
chip_gen: v7x
topology: tpu7x:2x2x1
jax: 0.10.0
libtpu: 0.0.40
codegen_flags: <defaults>
</compile_context>

<pallas_src>
import functools

import jax
import jax.numpy as jnp
from jax.experimental import pallas as pl
from jax.experimental.pallas import tpu as pltpu

EPS = 1e-06
_TARGET_TILE_BYTES = 4 << 20      # ~4 MiB per (input | output) pipeline buffer
_VMEM_LIMIT_BYTES = 32 << 20      # > v5e's 16 MiB default scope, <= every gen's VMEM


def _round_up(a: int, b: int) -> int:
    return (a + b - 1) // b * b


def _sublane_multiple(dtype) -> int:
    # Sub-32-bit dtypes pack along sublanes: 8 rows (f32), 16 (bf16), 32 (int8/fp8).
    return max(8, 32 // jnp.dtype(dtype).itemsize)


# --------------------------------------------------------------------------
# Kernel
# --------------------------------------------------------------------------
def _esoftmax_kernel(x_ref, o_ref, *, inv_d: float, offset_low: float):
    x = x_ref[...].astype(jnp.float32)                       # (tr, D)
    mean = jnp.sum(x, axis=-1, keepdims=True) * jnp.float32(inv_d)
    off = jnp.where(x < mean, jnp.float32(offset_low), jnp.float32(1.0))
    z = x - jnp.max(x, axis=-1, keepdims=True)               # exact per-row max
    p = jnp.exp(z) * off
    # The row-max element always has off == 1 (max >= mean), so denom >= 1:
    # the EUP reciprocal seed + one Newton step is ~f32 accurate and can never
    # see 0, while the divide stays off the VALU critical path.
    denom = jnp.sum(p, axis=-1, keepdims=True)
    r = pl.reciprocal(denom, approx=True)
    r = r * (jnp.float32(2.0) - denom * r)
    o_ref[...] = (p * r).astype(o_ref.dtype)


# --------------------------------------------------------------------------
# Wrapper
# --------------------------------------------------------------------------
def _esoftmax_lastdim(x: jax.Array, offset_low: float) -> jax.Array:
    orig_shape = x.shape
    D = orig_shape[-1]
    R = 1
    for s in orig_shape[:-1]:
        R *= s
    x2 = x.reshape(R, D)      # leading-dim collapse only: layout-preserving

    sub = _sublane_multiple(x.dtype)
    itemsize = jnp.dtype(x.dtype).itemsize
    row_bytes = max(1, D * itemsize)
    # Largest sublane-aligned row tile within the per-buffer budget.
    max_tr = max(sub, (_TARGET_TILE_BYTES // row_bytes) // sub * sub)
    # TODO(synk): for pathologically wide rows (D*itemsize >> 4 MiB) the 8-row
    # minimum tile can exceed the requested VMEM limit; not a VQVAE shape.

    steps = pl.cdiv(R, max_tr)
    if R >= 2 * sub:
        # v7x megacore: at least 2 (and an even number of) grid steps so both
        # TensorCores get balanced work; harmless on single-core v5e / v6e.
        steps = max(steps, 2)
        steps += steps % 2
    tr = min(max_tr, _round_up(pl.cdiv(R, steps), sub))
    grid = (pl.cdiv(R, tr),)   # ragged R: Pallas clamps the edge block (no pad/slice)

    n = R * D
    cost = pl.CostEstimate(flops=10 * n, transcendentals=n,
                           bytes_accessed=2 * n * itemsize)

    out2 = pl.pallas_call(
        functools.partial(_esoftmax_kernel, inv_d=1.0 / D, offset_low=offset_low),
        out_shape=jax.ShapeDtypeStruct((R, D), x.dtype),
        grid=grid,
        in_specs=[pl.BlockSpec((tr, D), lambda i: (i, 0))],
        out_specs=pl.BlockSpec((tr, D), lambda i: (i, 0)),
        compiler_params=pltpu.CompilerParams(
            dimension_semantics=("parallel",),
            vmem_limit_bytes=_VMEM_LIMIT_BYTES),
        cost_estimate=cost,
    )(x2)
    return out2.reshape(orig_shape)


def esoftmax_pallas(x: jax.Array, dim: int = -1, training: bool = True) -> jax.Array:
    """ESoftmax forward matching the PyTorch module."""
    axis = dim if dim >= 0 else dim + x.ndim
    if not 0 <= axis < x.ndim:
        raise ValueError(f"dim {dim} out of range for rank {x.ndim}")
    offset_low = EPS if training else 0.0
    if axis == x.ndim - 1:
        return _esoftmax_lastdim(x, offset_low)
    # TODO(synk): non-last `dim` pays two XLA transposes; a dedicated kernel
    # reducing over a non-minor axis would avoid them (module default is -1).
    xt = jnp.moveaxis(x, axis, -1)
    out = _esoftmax_lastdim(xt, offset_low)
    return jnp.moveaxis(out, -1, axis)


def esoftmax_ref(x: jax.Array, dim: int = -1, training: bool = True) -> jax.Array:
    """Pure-JAX reference matching the PyTorch esoftmax."""
    xf = x.astype(jnp.float32)
    mean = jnp.mean(xf, axis=dim, keepdims=True)
    off = jnp.where(xf < mean, EPS if training else 0.0, 1.0)
    p = jax.nn.softmax(xf, axis=dim) * off
    return (p / jnp.sum(p, axis=dim, keepdims=True)).astype(x.dtype)


if __name__ == "__main__":
    key = jax.random.PRNGKey(0)
    k1, k2, k3, k4 = jax.random.split(key, 4)

    # NCHW-style VQVAE feature map, esoftmax along the last dim (W = 16).
    x = jax.random.normal(k1, (2, 4, 16, 16), dtype=jnp.float32)
    out = jax.block_until_ready(esoftmax_pallas(x, dim=-1, training=True))
    ref = esoftmax_ref(x, training=True)
    assert out.shape == x.shape and out.dtype == x.dtype
    assert jnp.allclose(out, ref, atol=1e-5, rtol=1e-5), "mismatch vs reference"
    assert jnp.allclose(jnp.sum(out, axis=-1), 1.0, atol=1e-5)

    # Ragged leading size -> exercises the clamped edge block (no pad / slice).
    x2 = jax.random.normal(k2, (3, 5, 7, 16), dtype=jnp.float32)
    out2 = jax.block_until_ready(esoftmax_pallas(x2, dim=-1, training=True))
    assert jnp.allclose(out2, esoftmax_ref(x2, training=True),
                        atol=1e-5, rtol=1e-5), "mismatch vs reference (ragged)"

    # Wide reduction dim (lane-dense rows) + eval mode (hard-zero offset).
    x3 = jax.random.normal(k3, (4, 8, 256), dtype=jnp.float32)
    out3 = jax.block_until_ready(esoftmax_pallas(x3, dim=-1, training=False))
    assert jnp.allclose(out3, esoftmax_ref(x3, training=False),
                        atol=1e-5, rtol=1e-5), "mismatch vs reference (wide/eval)"

    # bf16 input: HBM traffic stays bf16, compute in f32, 16-row sublane tiles.
    x4 = jax.random.normal(k4, (2, 4, 16, 16), dtype=jnp.bfloat16)
    out4 = jax.block_until_ready(esoftmax_pallas(x4, dim=-1, training=True))
    ref4 = esoftmax_ref(x4, training=True)
    assert out4.dtype == jnp.bfloat16
    assert jnp.allclose(out4.astype(jnp.float32), ref4.astype(jnp.float32),
                        atol=1.5e-2, rtol=0), "mismatch vs reference (bf16)"

    print("KERNEL_OK")
</pallas_src>

<mosaic_0001>
module attributes {stable_mosaic.version = 11 : i64} {
  func.func @_esoftmax_kernel(%arg0: i32, %arg1: memref<64x16xf32, #tpu.memory_space<vmem>>, %arg2: memref<64x16xf32, #tpu.memory_space<vmem>>) attributes {dimension_semantics = [#tpu.dimension_semantics<parallel>], iteration_bounds = array<i64: 2>, scalar_prefetch = 0 : i64, scratch_operands = 0 : i64, tpu.core_type = #tpu.core_type<tc>, window_params = [{transform_indices = @transform_0, window_bounds = array<i64: 64, 16>}, {transform_indices = @transform_1, window_bounds = array<i64: 64, 16>}]} {
    %c0 = arith.constant 0 : index
    %c0_0 = arith.constant 0 : index
    %0 = vector.load %arg1[%c0, %c0_0] : memref<64x16xf32, #tpu.memory_space<vmem>>, vector<64x16xf32>
    %cst = arith.constant dense<0.000000e+00> : vector<64xf32>
    %1 = vector.multi_reduction <add>, %0, %cst [1] : vector<64x16xf32> to vector<64xf32>
    %2 = vector.shape_cast %1 : vector<64xf32> to vector<64x1xf32>
    %cst_1 = arith.constant 6.250000e-02 : f32
    %3 = vector.broadcast %cst_1 : f32 to vector<64x1xf32>
    %4 = arith.mulf %2, %3 : vector<64x1xf32>
    %5 = vector.broadcast %4 : vector<64x1xf32> to vector<64x16xf32>
    %6 = arith.cmpf olt, %0, %5 : vector<64x16xf32>
    %cst_2 = arith.constant 9.99999997E-7 : f32
    %cst_3 = arith.constant 1.000000e+00 : f32
    %7 = vector.broadcast %cst_2 : f32 to vector<64x16xf32>
    %8 = vector.broadcast %cst_3 : f32 to vector<64x16xf32>
    %9 = arith.select %6, %7, %8 : vector<64x16xi1>, vector<64x16xf32>
    %cst_4 = arith.constant dense<0xFF800000> : vector<64xf32>
    %10 = vector.multi_reduction <maximumf>, %0, %cst_4 [1] : vector<64x16xf32> to vector<64xf32>
    %11 = vector.shape_cast %10 : vector<64xf32> to vector<64x1xf32>
    %12 = vector.broadcast %11 : vector<64x1xf32> to vector<64x16xf32>
    %13 = arith.subf %0, %12 : vector<64x16xf32>
    %14 = math.exp %13 : vector<64x16xf32>
    %15 = arith.mulf %14, %9 : vector<64x16xf32>
    %cst_5 = arith.constant dense<0.000000e+00> : vector<64xf32>
    %16 = vector.multi_reduction <add>, %15, %cst_5 [1] : vector<64x16xf32> to vector<64xf32>
    %17 = vector.shape_cast %16 : vector<64xf32> to vector<64x1xf32>
    %18 = tpu.reciprocal %17 {approx = true} : vector<64x1xf32> -> vector<64x1xf32>
    %19 = arith.mulf %17, %18 : vector<64x1xf32>
    %cst_6 = arith.constant 2.000000e+00 : f32
    %20 = vector.broadcast %cst_6 : f32 to vector<64x1xf32>
    %21 = arith.subf %20, %19 : vector<64x1xf32>
    %22 = arith.mulf %18, %21 : vector<64x1xf32>
    %23 = vector.broadcast %22 : vector<64x1xf32> to vector<64x16xf32>
    %24 = arith.mulf %15, %23 : vector<64x16xf32>
    %c0_7 = arith.constant 0 : index
    %c0_8 = arith.constant 0 : index
    %25 = vector.load %arg2[%c0_7, %c0_8] : memref<64x16xf32, #tpu.memory_space<vmem>>, vector<64x16xf32>
    tpu.vector_store %arg2[%c0_7, %c0_8], %24 {strides = array<i32>} : memref<64x16xf32, #tpu.memory_space<vmem>>, vector<64x16xf32>,
    return
  }
  func.func @transform_0(%arg0: i32) -> (i32, i32) {
    %c0_i32 = arith.constant 0 : i32
    %c0_i32_0 = arith.constant 0 : i32
    return %arg0, %c0_i32 : i32, i32
  }
  func.func @transform_1(%arg0: i32) -> (i32, i32) {
    %c0_i32 = arith.constant 0 : i32
    %c0_i32_0 = arith.constant 0 : i32
    return %arg0, %c0_i32 : i32, i32
  }
}

</mosaic_0001>

<bundles_post_ra>
// kernel: tpu_custom_call.1
= control target key start
LH: loop header
LB: loop body
LE: loop exit
PB: predicated region body
PF: predicated region fallthrough
CT: control target
= control target key end

     0   :  { %s432_s6 = smov 0   ;;  %s578_s0 = inlined_call_operand.vmem [shape: f32[128,16], index: 0, kind: input, shape index: {}]   ;;  %s579_s1 = inlined_call_operand.vmem [shape: f32[128,16], index: 1, kind: output, shape index: {}]  }
   0x1 LB: > { %s361_s7 = sadd.s32 4294967295, %s419_s6   ;;  %p365_p0 = scmp.ge.s32.totalorder %s419_s6, 1  ;;  %s419_s6 = sphi %s432_s6, %s11_s6  }
   0x2   : > { %p88_p1 = scmp.lt.s32.totalorder %s419_s6, 3 }
   0x4   : > { %p89_p2 = pnand %p365_p0, %p88_p1 }
   0x5   : > { %s366_s8 = sshll.u32 (!%p89_p2), %s361_s7, 3  ;;  %vm128_vm0 = vcmask (!%p89_p2), 130048   ;;  %v421_v56 = vmov (!%p89_p2), 1.0  }
   0x6   : > { %92 = sbr.rel (%p89_p2) target bundleno = 358 (0x166), region = 24  ;;  %p109_p3 = scmp.lt.s32.totalorder (!%p89_p2), %s366_s8, 15 }
   0xd   : > { %s581_s8 = smov (!%p109_p3, %s366_s8), 15 }
   0xe   : > { %s367_s9 = sshll.u32 %s581_s8, 3 }
   0xf   : > { %s112_s12 = scalar_lea.vmem %s578_s0, %s367_s9  ;;  %s549_s15 = scalar_lea.vmem %s579_s1, %s367_s9 }
  0x10   : > { %v448_v0 = vld [vmem:[%s112_s12 + $0x10] sm:$0xff]  ;;  %v450_v1 = vld [vmem:[%s112_s12] sm:$0xff]  ;;  %v452_v2 = vld [vmem:[%s112_s12 + $0x18] sm:$0xff] }
  0x11   : > { %v183_v3 = vsel %vm128_vm0, %v448_v0, -inf  ;;  %v177_v4 = vsel %vm128_vm0, %v450_v1, -inf  ;;  %v458_v5 = vld [vmem:[%s112_s12 + $0x8] sm:$0xff]  ;;  %v186_v6 = vsel %vm128_vm0, %v452_v2, -inf  ;;  %v466_v9 = vld [vmem:[%s112_s12 + $0x20] sm:$0xff]  ;;  %v472_v12 = vld [vmem:[%s112_s12 + $0x38] sm:$0xff] }
  0x12   : > { %184 = vmax.xlane.f32.xlu1 %v183_v3  ;;  %178 = vmax.xlane.f32.xlu0 %v177_v4  ;;  %v180_v7 = vsel %vm128_vm0, %v458_v5, -inf  ;;  %v464_v8 = vld [vmem:[%s112_s12 + $0x28] sm:$0xff]  ;;  %v189_v11 = vsel %vm128_vm0, %v466_v9, -inf  ;;  %v474_v13 = vld [vmem:[%s112_s12 + $0x30] sm:$0xff]  ;;  %v198_v14 = vsel %vm128_vm0, %v472_v12, -inf  ;;  %v132_v16 = vsel %vm128_vm0, %v458_v5, 0.0 }
  0x13   : > { %v192_v10 = vsel %vm128_vm0, %v464_v8, -inf  ;;  %v195_v15 = vsel %vm128_vm0, %v474_v13, -inf  ;;  %v129_v17 = vsel %vm128_vm0, %v450_v1, 0.0  ;;  %v138_v18 = vsel %vm128_vm0, %v452_v2, 0.0 }
  0x14   : > { %v135_v19 = vsel %vm128_vm0, %v448_v0, 0.0  ;;  %v144_v20 = vsel %vm128_vm0, %v464_v8, 0.0  ;;  %v141_v21 = vsel %vm128_vm0, %v466_v9, 0.0  ;;  %v150_v22 = vsel %vm128_vm0, %v472_v12, 0.0 }
  0x15   : > { %v147_v23 = vsel %vm128_vm0, %v474_v13, 0.0 }
  0x16   : > { %187 = vmax.xlane.f32.xlu1 %v186_v6  ;;  %181 = vmax.xlane.f32.xlu0 %v180_v7 }
  0x1a   : > { %193 = vmax.xlane.f32.xlu1 %v192_v10  ;;  %190 = vmax.xlane.f32.xlu0 %v189_v11 }
  0x1e   : > { %199 = vmax.xlane.f32.xlu1 %v198_v14  ;;  %196 = vmax.xlane.f32.xlu0 %v195_v15 }
  0x22   : > { %133 = vadd.xlane.f32.xlu1 %v132_v16  ;;  %130 = vadd.xlane.f32.xlu0 %v129_v17 }
  0x26   : > { %139 = vadd.xlane.f32.xlu1 %v138_v18  ;;  %136 = vadd.xlane.f32.xlu0 %v135_v19 }
  0x2a   : > { %145 = vadd.xlane.f32.xlu1 %v144_v20  ;;  %142 = vadd.xlane.f32.xlu0 %v141_v21 }
  0x2e   : > { %151 = vadd.xlane.f32.xlu1 %v150_v22  ;;  %148 = vadd.xlane.f32.xlu0 %v147_v23 }
  0x9f   : > { %v185_v24 = vpop.xlane.xlu1 %184  ;;  %v179_v25 = vpop.xlane.xlu0 %178 }
  0xa0   : > { %v201_v26 = vsub.f32 %v450_v1, %v179_v25  ;;  %v203_v29 = vsub.f32 %v448_v0, %v185_v24 }
  0xa2   : > { %v209_v30 = vmul.f32 1.442695, %v201_v26  ;;  %v213_v36 = vmul.f32 1.442695, %v203_v29 }
  0xa3   : > { %v188_v27 = vpop.xlane.xlu1 %187  ;;  %v182_v28 = vpop.xlane.xlu0 %181 }
  0xa4   : > { %v202_v31 = vsub.f32 %v458_v5, %v182_v28  ;;  %v204_v32 = vsub.f32 %v452_v2, %v188_v27  ;;  %381 = vpow2.f32 %v209_v30 }
  0xa6   : > { %v211_v33 = vmul.f32 1.442695, %v202_v31  ;;  %v215_v38 = vmul.f32 1.442695, %v204_v32 }
  0xa7   : > { %v194_v34 = vpop.xlane.xlu1 %193  ;;  %v191_v35 = vpop.xlane.xlu0 %190 }
  0xa8   : > { %v206_v37 = vsub.f32 %v464_v8, %v194_v34  ;;  %383 = vpow2.f32 %v211_v33  ;;  %v205_v39 = vsub.f32 %v466_v9, %v191_v35 }
  0xa9   : > { %385 = vpow2.f32 %v213_v36 }
  0xaa   : > { %v219_v42 = vmul.f32 1.442695, %v206_v37  ;;  %387 = vpow2.f32 %v215_v38  ;;  %v217_v44 = vmul.f32 1.442695, %v205_v39 }
  0xab   : > { %v200_v40 = vpop.xlane.xlu1 %199  ;;  %v197_v41 = vpop.xlane.xlu0 %196 }
  0xac   : > { %v208_v43 = vsub.f32 %v472_v12, %v200_v40  ;;  %v207_v45 = vsub.f32 %v474_v13, %v197_v41  ;;  %389 = vpow2.f32 %v219_v42 }
  0xad   : > { %391 = vpow2.f32 %v217_v44 }
  0xae   : > { %v223_v46 = vmul.f32 1.442695, %v208_v43  ;;  %v221_v51 = vmul.f32 1.442695, %v207_v45  ;;  %v382_v52 = vpop.eup %381 }
  0xaf   : > { %v134_v47 = vpop.xlane.xlu1 %133  ;;  %v131_v48 = vpop.xlane.xlu0 %130 }
  0xb0   : > { %v154_v49 = vmul.f32 0.0625, %v134_v47  ;;  %v153_v50 = vmul.f32 0.0625, %v131_v48  ;;  %393 = vpow2.f32 %v223_v46 }
  0xb1   : > { %395 = vpow2.f32 %v221_v51 }
  0xb2   : > { %vm162_vm1 = vcmp.lt.f32.partialorder %v458_v5, %v154_v49  ;;  %vm161_vm2 = vcmp.lt.f32.partialorder %v450_v1, %v153_v50  ;;  %v384_v53 = vpop.eup %383 }
  0xb3   : > { %v140_v54 = vpop.xlane.xlu1 %139  ;;  %v137_v55 = vpop.xlane.xlu0 %136  ;;  %v170_v57 = vsel %vm162_vm1, 1e-06, %v421_v56  ;;  %v169_v58 = vsel %vm161_vm2, 1e-06, %v421_v56 }
  0xb4   : > { %v156_v59 = vmul.f32 0.0625, %v140_v54  ;;  %v155_v60 = vmul.f32 0.0625, %v137_v55  ;;  %v506_v61 = vmul.f32 %v384_v53, %v170_v57  ;;  %v508_v62 = vmul.f32 %v382_v52, %v169_v58  ;;  %v386_v63 = vpop.eup %385 }
  0xb5   : > { %v388_v4 = vpop.eup %387 }
  0xb6   : > { %vm164_vm3 = vcmp.lt.f32.partialorder %v452_v2, %v156_v59  ;;  %vm163_vm4 = vcmp.lt.f32.partialorder %v448_v0, %v155_v60  ;;  %v236_v1 = vsel %vm128_vm0, %v506_v61, 0.0  ;;  %v233_v3 = vsel %vm128_vm0, %v508_v62, 0.0  ;;  %v390_v0 = vpop.eup %389 }
  0xb7   : > { %v146_v5 = vpop.xlane.xlu1 %145  ;;  %237 = vadd.xlane.f32.xlu1 %v236_v1  ;;  %234 = vadd.xlane.f32.xlu0 %v233_v3  ;;  %v143_v6 = vpop.xlane.xlu0 %142  ;;  %v172_v7 = vsel %vm164_vm3, 1e-06, %v421_v56  ;;  %v171_v10 = vsel %vm163_vm4, 1e-06, %v421_v56 }
  0xb8   : > { %v158_v11 = vmul.f32 0.0625, %v146_v5  ;;  %v157_v14 = vmul.f32 0.0625, %v143_v6  ;;  %v516_v15 = vmul.f32 %v388_v4, %v172_v7  ;;  %v518_v2 = vmul.f32 %v386_v63, %v171_v10  ;;  %v392_v18 = vpop.eup %391 }
  0xba   : > { %vm166_vm5 = vcmp.lt.f32.partialorder %v464_v8, %v158_v11  ;;  %vm165_vm6 = vcmp.lt.f32.partialorder %v466_v9, %v157_v14  ;;  %v242_v16 = vsel %vm128_vm0, %v516_v15, 0.0  ;;  %v239_v17 = vsel %vm128_vm0, %v518_v2, 0.0  ;;  %v394_v9 = vpop.eup %393 }
  0xbb   : > { %v152_v19 = vpop.xlane.xlu1 %151  ;;  %243 = vadd.xlane.f32.xlu1 %v242_v16  ;;  %240 = vadd.xlane.f32.xlu0 %v239_v17  ;;  %v149_v20 = vpop.xlane.xlu0 %148  ;;  %v174_v21 = vsel %vm166_vm5, 1e-06, %v421_v56  ;;  %v173_v22 = vsel %vm165_vm6, 1e-06, %v421_v56 }
  0xbc   : > { %v160_v23 = vmul.f32 0.0625, %v152_v19  ;;  %v159_v24 = vmul.f32 0.0625, %v149_v20  ;;  %v526_v25 = vmul.f32 %v390_v0, %v174_v21  ;;  %v528_v8 = vmul.f32 %v392_v18, %v173_v22  ;;  %v396_v28 = vpop.eup %395 }
  0xbe   : > { %vm168_vm7 = vcmp.lt.f32.partialorder %v472_v12, %v160_v23  ;;  %vm167_vm8 = vcmp.lt.f32.partialorder %v474_v13, %v159_v24  ;;  %v248_v26 = vsel %vm128_vm0, %v526_v25, 0.0  ;;  %v245_v27 = vsel %vm128_vm0, %v528_v8, 0.0 }
  0xbf   : > { %249 = vadd.xlane.f32.xlu1 %v248_v26  ;;  %246 = vadd.xlane.f32.xlu0 %v245_v27  ;;  %v176_v29 = vsel %vm168_vm7, 1e-06, %v421_v56  ;;  %v175_v30 = vsel %vm167_vm8, 1e-06, %v421_v56 }
  0xc0   : > { %v536_v31 = vmul.f32 %v394_v9, %v176_v29  ;;  %v538_v32 = vmul.f32 %v396_v28, %v175_v30 }
  0xc2   : > { %v254_v12 = vsel %vm128_vm0, %v536_v31, 0.0  ;;  %v251_v13 = vsel %vm128_vm0, %v538_v32, 0.0 }
  0xc3   : > { %255 = vadd.xlane.f32.xlu1 %v254_v12  ;;  %252 = vadd.xlane.f32.xlu0 %v251_v13 }
 0x144   : > { %v238_v33 = vpop.xlane.xlu1 %237  ;;  %v235_v34 = vpop.xlane.xlu0 %234 }
 0x145   : > { %397 = vrcp.f32 %v238_v33 }
 0x146   : > { %399 = vrcp.f32 %v235_v34 }
 0x148   : > { %v244_v35 = vpop.xlane.xlu1 %243  ;;  %v241_v36 = vpop.xlane.xlu0 %240 }
 0x149   : > { %401 = vrcp.f32 %v244_v35 }
 0x14a   : > { %403 = vrcp.f32 %v241_v36 }
 0x14c   : > { %v250_v37 = vpop.xlane.xlu1 %249  ;;  %v247_v38 = vpop.xlane.xlu0 %246 }
 0x14d   : > { %405 = vrcp.f32 %v250_v37 }
 0x14e   : > { %407 = vrcp.f32 %v247_v38 }
 0x14f   : > { %v398_v39 = vpop.eup %397 }
 0x150   : > { %v400_v40 = vpop.eup %399  ;;  %v266_v41 = vmul.f32 %v398_v39, %v238_v33  ;;  %v256_v42 = vpop.xlane.xlu1 %255 }
 0x151   : > { %v253_v43 = vpop.xlane.xlu0 %252  ;;  %v265_v44 = vmul.f32 %v400_v40, %v235_v34  ;;  %409 = vrcp.f32 %v256_v42 }
 0x152   : > { %v274_v45 = vsub.f32 2.0, %v266_v41  ;;  %411 = vrcp.f32 %v253_v43 }
 0x153   : > { %v402_v46 = vpop.eup %401  ;;  %v273_v47 = vsub.f32 2.0, %v265_v44 }
 0x154   : > { %v404_v48 = vpop.eup %403  ;;  %v282_v49 = vmul.f32 %v398_v39, %v274_v45  ;;  %v268_v50 = vmul.f32 %v402_v46, %v244_v35 }
 0x155   : > { %v281_v51 = vmul.f32 %v400_v40, %v273_v47  ;;  %v267_v52 = vmul.f32 %v404_v48, %v241_v36 }
 0x156   : > { %v290_v53 = vmul.f32 %v282_v49, %v506_v61  ;;  %v276_v54 = vsub.f32 2.0, %v268_v50 }
 0x157   : > { %v406_v55 = vpop.eup %405  ;;  %v289_v56 = vmul.f32 %v281_v51, %v508_v62  ;;  %v275_v57 = vsub.f32 2.0, %v267_v52 }
 0x158   : > { %v408_v58 = vpop.eup %407  ;;  %298 = vst.msk [vmem:[%s549_s15 + $0x8] sm:$0xff] %vm128_vm0, %v290_v53  ;;  %v284_v59 = vmul.f32 %v402_v46, %v276_v54  ;;  %v270_v60 = vmul.f32 %v406_v55, %v250_v37 }
 0x159   : > { %297 = vst.msk [vmem:[%s549_s15] sm:$0xff] %vm128_vm0, %v289_v56  ;;  %v283_v63 = vmul.f32 %v404_v48, %v275_v57  ;;  %v269_v1 = vmul.f32 %v408_v58, %v247_v38 }
 0x15a   : > { %v292_v3 = vmul.f32 %v284_v59, %v516_v15  ;;  %v278_v61 = vsub.f32 2.0, %v270_v60 }
 0x15b   : > { %v410_v4 = vpop.eup %409  ;;  %v291_v5 = vmul.f32 %v283_v63, %v518_v2  ;;  %v277_v62 = vsub.f32 2.0, %v269_v1 }
 0x15c   : > { %v412_v6 = vpop.eup %411  ;;  %300 = vst.msk [vmem:[%s549_s15 + $0x18] sm:$0xff] %vm128_vm0, %v292_v3  ;;  %v286_v7 = vmul.f32 %v406_v55, %v278_v61  ;;  %v272_v10 = vmul.f32 %v410_v4, %v256_v42 }
 0x15d   : > { %299 = vst.msk [vmem:[%s549_s15 + $0x10] sm:$0xff] %vm128_vm0, %v291_v5  ;;  %v285_v11 = vmul.f32 %v408_v58, %v277_v62  ;;  %v271_v14 = vmul.f32 %v412_v6, %v253_v43 }
 0x15e   : > { %v294_v15 = vmul.f32 %v286_v7, %v526_v25  ;;  %v280_v0 = vsub.f32 2.0, %v272_v10 }
 0x15f   : > { %v293_v16 = vmul.f32 %v285_v11, %v528_v8  ;;  %v279_v17 = vsub.f32 2.0, %v271_v14 }
 0x160   : > { %302 = vst.msk [vmem:[%s549_s15 + $0x28] sm:$0xff] %vm128_vm0, %v294_v15  ;;  %v288_v2 = vmul.f32 %v410_v4, %v280_v0 }
 0x161   : > { %301 = vst.msk [vmem:[%s549_s15 + $0x20] sm:$0xff] %vm128_vm0, %v293_v16  ;;  %v287_v18 = vmul.f32 %v412_v6, %v279_v17 }
 0x162   : > { %v296_v19 = vmul.f32 %v288_v2, %v536_v31 }
 0x163   : > { %v295_v20 = vmul.f32 %v287_v18, %v538_v32 }
 0x164   : > { %304 = vst.msk [vmem:[%s549_s15 + $0x38] sm:$0xff] %vm128_vm0, %v296_v19 }
 0x165   : > { %303 = vst.msk [vmem:[%s549_s15 + $0x30] sm:$0xff] %vm128_vm0, %v295_v20 }
 0x166 PF: > { %s11_s6 = sadd.s32 1, %s419_s6  }
 0x167   : > { %p8_p4 = scmp.ge.s32.totalorder %s11_s6, 4  }
 0x169   :  { %10 = sbr.rel (!%p8_p4) target bundleno = 1 (0x1), region = 54 }

</bundles_post_ra>
